<compile_context>
chip_gen: v7x
topology: tpu7x:2x2x1
jax: 0.10.0
libtpu: 0.0.40
codegen_flags: <defaults>
</compile_context>

<pallas_src>
import functools

import jax
import jax.numpy as jnp
from jax import lax
from jax.experimental import pallas as pl
from jax.experimental.pallas import tpu as pltpu

_LANE = 128


# ----------------------------- Pallas kernel --------------------------------

def _gemm_bn_relu_kernel(w_ref, p_ref, shift_ref, o_ref):
    """out = relu(W @ P + shift) for one lane-tile of output positions.

    w_ref:     (N, K)  bf16  conv weights (BN scale folded in), grid-invariant
    p_ref:     (K, tm) bf16  im2col patches^T (output positions on lanes)
    shift_ref: (N, 1)  f32   folded BN shift (beta - mean * scale)
    o_ref:     (N, tm)       output tile; tm is a multiple of 128 -> lane-dense
    """
    acc = jnp.dot(w_ref[...], p_ref[...], preferred_element_type=jnp.float32)
    y = acc + shift_ref[...]                 # f32 epilogue (v5e: no bf16 VPU)
    o_ref[...] = jnp.maximum(y, 0.0).astype(o_ref.dtype)


def fused_conv_bn_relu_gemm(w2d, pT, shift, *, tm=1024, out_dtype=jnp.float32):
    """relu(w2d @ pT + shift[:, None]) via a lane-dense Pallas GEMM.

    w2d:   (N, K) f32   conv weights reshaped for GEMM, BN scale folded in.
    pT:    (K, M) bf16  transposed im2col patches (contraction on sublanes).
    shift: (N,)   f32   folded BN shift.
    Returns (N, M) array of out_dtype.
    """
    N, K = w2d.shape
    K2, M = pT.shape
    assert K == K2

    # Keep the lane axis at least one full 128-lane vreg wide; beyond that rely
    # on Pallas boundary-block handling instead of padding the (k*k-expanded)
    # patch matrix up to a multiple of the tile size.
    Mp = ((M + _LANE - 1) // _LANE) * _LANE
    if Mp != M:
        pT = jnp.pad(pT, ((0, 0), (0, Mp - M)))

    out_bytes = jnp.dtype(out_dtype).itemsize

    def vmem_need(t):
        # double-buffered input/output tiles + resident weights/shift
        return 2 * (N * K * 2 + K * t * 2 + N * 4 + N * t * out_bytes)

    tm_eff = max(_LANE, (min(tm, Mp) // _LANE) * _LANE)
    budget = 40 * 1024 * 1024            # conservative: fits v7x's 64 MiB VMEM
    while tm_eff > _LANE and vmem_need(tm_eff) > budget:
        tm_eff = max(_LANE, ((tm_eff // 2) // _LANE) * _LANE)

    cp = dict(dimension_semantics=("parallel",))  # shards M over v7x's 2 TCs
    if vmem_need(tm_eff) > 12 * 1024 * 1024:
        # Only request more scoped VMEM when the tiling actually needs it.
        cp["vmem_limit_bytes"] = 48 * 1024 * 1024

    grid_m = pl.cdiv(Mp, tm_eff)
    out = pl.pallas_call(
        _gemm_bn_relu_kernel,
        out_shape=jax.ShapeDtypeStruct((N, Mp), out_dtype),
        grid_spec=pltpu.PrefetchScalarGridSpec(
            num_scalar_prefetch=0,
            grid=(grid_m,),
            in_specs=[
                pl.BlockSpec((N, K), lambda i: (0, 0)),       # weights (resident)
                pl.BlockSpec((K, tm_eff), lambda i: (0, i)),  # patch tile
                pl.BlockSpec((N, 1), lambda i: (0, 0)),       # BN shift
            ],
            out_specs=pl.BlockSpec((N, tm_eff), lambda i: (0, i)),
        ),
        compiler_params=pltpu.CompilerParams(**cp),
    )(w2d.astype(jnp.bfloat16), pT.astype(jnp.bfloat16),
      shift.reshape(N, 1).astype(jnp.float32))
    return out[:, :M]


# ----------------------- glue (channel-leading im2col) -----------------------

def _bn_fold(gamma, beta, mean, var, eps=1e-3):
    scale = gamma / jnp.sqrt(var + eps)
    shift = beta - mean * scale
    return scale, shift


def _im2col_spatial_T(x, k, s, p):
    """x: (C, B, T, H, W) -> P^T (C*k*k, B*T*Ho*Wo); no transposes needed."""
    C, B, T, H, W = x.shape
    xp = jnp.pad(x, ((0, 0), (0, 0), (0, 0), (p, p), (p, p)))
    Ho = (H + 2 * p - k) // s + 1
    Wo = (W + 2 * p - k) // s + 1
    cols = [xp[:, :, :, kh:kh + s * Ho:s, kw:kw + s * Wo:s]
            for kh in range(k) for kw in range(k)]
    pT = jnp.stack(cols, axis=1).reshape(C * k * k, B * T * Ho * Wo)
    return pT, Ho, Wo


def _im2col_temporal_T(x, k, s, p):
    """x: (C, B, T, H, W) -> P^T (C*k, B*To*H*W); no transposes needed."""
    C, B, T, H, W = x.shape
    xp = jnp.pad(x, ((0, 0), (0, 0), (p, p), (0, 0), (0, 0)))
    To = (T + 2 * p - k) // s + 1
    cols = [xp[:, :, kt:kt + s * To:s, :, :] for kt in range(k)]
    pT = jnp.stack(cols, axis=1).reshape(C * k, B * To * H * W)
    return pT, To


# ----------------------------- SepConv3d forward -----------------------------

def sep_conv3d_forward(x, params, *, kernel_size, stride, padding=0,
                       coord_setting=None):
    """x: (B, C, T, H, W) float32 (PyTorch NCTHW). Returns (B, Cout, To, Ho, Wo)."""
    B, C, T, H, W = x.shape
    k, s, p = kernel_size, stride, padding

    # Single layout change on the small raw input: channel-leading
    # (C, B, T, H, W). Both stages read/produce channel-leading data, so there
    # is no NCTHW <-> channels-last round trip between the two Pallas calls.
    xc = jnp.transpose(x, (1, 0, 2, 3, 4))

    if coord_setting is not None:
        h_idx = (jnp.arange(H, dtype=jnp.float32) / H - 0.5) / 0.5
        w_idx = (jnp.arange(W, dtype=jnp.float32) / W - 0.5) / 0.5
        h_ch = jnp.broadcast_to(h_idx.reshape(1, 1, 1, H, 1), (1, B, T, H, W))
        w_ch = jnp.broadcast_to(w_idx.reshape(1, 1, 1, 1, W), (1, B, T, H, W))
        xc = jnp.concatenate([xc, h_ch, w_ch], axis=0)

    xc = xc.astype(jnp.bfloat16)   # bf16 MXU operands; halves im2col HBM bytes

    # ---- spatial conv (1,k,k) + BN + ReLU ----
    w_s = params["conv_s_w"]                       # (Cout, Cin_s, 1, k, k)
    Cout, Cin_s = w_s.shape[0], w_s.shape[1]
    scale_s, shift_s = _bn_fold(params["bn_s_gamma"], params["bn_s_beta"],
                                params["bn_s_mean"], params["bn_s_var"])
    w_s2d = w_s.reshape(Cout, Cin_s * k * k) * scale_s[:, None]   # fold BN scale
    pT_s, Ho, Wo = _im2col_spatial_T(xc, k, s, p)
    y = fused_conv_bn_relu_gemm(w_s2d, pT_s, shift_s, out_dtype=jnp.bfloat16)
    y = y.reshape(Cout, B, T, Ho, Wo)              # channel-leading, no transpose

    if coord_setting == "all":
        t_idx = (jnp.arange(T, dtype=jnp.float32) - 0.5) / 0.5
        t_ch = jnp.broadcast_to(t_idx.reshape(1, 1, T, 1, 1), (1, B, T, Ho, Wo))
        y = jnp.concatenate([y, t_ch.astype(y.dtype)], axis=0)

    # ---- temporal conv (k,1,1) + BN + ReLU ----
    w_t = params["conv_t_w"]                       # (Cout, Cin_t, k, 1, 1)
    Cin_t = w_t.shape[1]
    scale_t, shift_t = _bn_fold(params["bn_t_gamma"], params["bn_t_beta"],
                                params["bn_t_mean"], params["bn_t_var"])
    w_t2d = w_t.reshape(Cout, Cin_t * k) * scale_t[:, None]
    pT_t, To = _im2col_temporal_T(y, k, s, p)
    z = fused_conv_bn_relu_gemm(w_t2d, pT_t, shift_t, out_dtype=jnp.float32)
    z = z.reshape(Cout, B, To, Ho, Wo)
    # Single final transpose back to PyTorch NCTHW.
    return jnp.transpose(z, (1, 0, 2, 3, 4))


# ----------------------------- pure-JAX reference ----------------------------

def sep_conv3d_reference(x, params, *, kernel_size, stride, padding=0,
                         coord_setting=None, match_bf16=False):
    """lax.conv reference. match_bf16=True mirrors the kernel's bf16 operand /
    bf16 intermediate precision (for a tight numerical comparison)."""
    k, s, p = kernel_size, stride, padding
    B, C, T, H, W = x.shape

    def q(a):
        return a.astype(jnp.bfloat16).astype(jnp.float32) if match_bf16 else a

    if coord_setting is not None:
        h_idx = (jnp.arange(H, dtype=jnp.float32) / H - 0.5) / 0.5
        w_idx = (jnp.arange(W, dtype=jnp.float32) / W - 0.5) / 0.5
        h_ch = jnp.broadcast_to(h_idx.reshape(1, 1, 1, H, 1), (B, 1, T, H, W))
        w_ch = jnp.broadcast_to(w_idx.reshape(1, 1, 1, 1, W), (B, 1, T, H, W))
        x = jnp.concatenate([x, h_ch, w_ch], axis=1)

    dn = ("NCDHW", "OIDHW", "NCDHW")

    sc, sh = _bn_fold(params["bn_s_gamma"], params["bn_s_beta"],
                      params["bn_s_mean"], params["bn_s_var"])
    w_s = params["conv_s_w"] * sc.reshape(-1, 1, 1, 1, 1)   # fold like the kernel
    y = lax.conv_general_dilated(q(x), q(w_s), (1, s, s),
                                 [(0, 0), (p, p), (p, p)], dimension_numbers=dn,
                                 precision=lax.Precision.HIGHEST)
    y = jnp.maximum(y + sh.reshape(1, -1, 1, 1, 1), 0.0)
    y = q(y)   # kernel stores the inter-stage activation as bf16

    if coord_setting == "all":
        Bb, _, Tt, Hh, Ww = y.shape
        t_idx = (jnp.arange(Tt, dtype=jnp.float32) - 0.5) / 0.5
        t_ch = jnp.broadcast_to(t_idx.reshape(1, 1, Tt, 1, 1), (Bb, 1, Tt, Hh, Ww))
        y = jnp.concatenate([y, t_ch], axis=1)

    sc, sh = _bn_fold(params["bn_t_gamma"], params["bn_t_beta"],
                      params["bn_t_mean"], params["bn_t_var"])
    w_t = params["conv_t_w"] * sc.reshape(-1, 1, 1, 1, 1)
    z = lax.conv_general_dilated(q(y), q(w_t), (s, 1, 1),
                                 [(p, p), (0, 0), (0, 0)], dimension_numbers=dn,
                                 precision=lax.Precision.HIGHEST)
    z = jnp.maximum(z + sh.reshape(1, -1, 1, 1, 1), 0.0)
    return z


# ----------------------------------- params ----------------------------------

def make_params(key, in_planes, out_planes, kernel_size, coord_setting=None):
    ks = jax.random.split(key, 8)
    in_s = in_planes + (2 if coord_setting is not None else 0)
    in_t = out_planes + (1 if coord_setting == "all" else 0)
    k = kernel_size
    return {
        "conv_s_w": 0.1 * jax.random.normal(ks[0], (out_planes, in_s, 1, k, k), jnp.float32),
        "conv_t_w": 0.1 * jax.random.normal(ks[1], (out_planes, in_t, k, 1, 1), jnp.float32),
        "bn_s_gamma": 1.0 + 0.1 * jax.random.normal(ks[2], (out_planes,), jnp.float32),
        "bn_s_beta": 0.1 * jax.random.normal(ks[3], (out_planes,), jnp.float32),
        "bn_s_mean": 0.05 * jax.random.normal(ks[4], (out_planes,), jnp.float32),
        "bn_s_var": jnp.abs(1.0 + 0.1 * jax.random.normal(ks[5], (out_planes,), jnp.float32)),
        "bn_t_gamma": 1.0 + 0.1 * jax.random.normal(ks[6], (out_planes,), jnp.float32),
        "bn_t_beta": 0.1 * jax.random.normal(ks[7], (out_planes,), jnp.float32),
        "bn_t_mean": jnp.zeros((out_planes,), jnp.float32),
        "bn_t_var": jnp.ones((out_planes,), jnp.float32),
    }


# ----------------------------------- main ------------------------------------

if __name__ == "__main__":
    key = jax.random.PRNGKey(0)

    # (B, Cin, Cout, T, H, W, kernel, stride, padding, coord_setting)
    configs = [
        (2, 4, 16, 4, 16, 16, 3, 1, 1, None),    # multi-tile grid (M = 2048)
        (1, 3, 8, 6, 8, 8, 3, 2, 1, "all"),      # coord channels + stride 2
    ]

    for idx, (B, Cin, Cout, T, H, W, k, s, p, coord) in enumerate(configs):
        kx, kp, key = jax.random.split(key, 3)
        x = jax.random.normal(kx, (B, Cin, T, H, W), jnp.float32)
        params = make_params(kp, Cin, Cout, k, coord)

        fwd = functools.partial(sep_conv3d_forward, kernel_size=k, stride=s,
                                padding=p, coord_setting=coord)
        out = jax.block_until_ready(jax.jit(fwd)(x, params))

        ref_match = sep_conv3d_reference(x, params, kernel_size=k, stride=s,
                                         padding=p, coord_setting=coord,
                                         match_bf16=True)
        ref_f32 = sep_conv3d_reference(x, params, kernel_size=k, stride=s,
                                       padding=p, coord_setting=coord,
                                       match_bf16=False)

        assert out.shape == ref_f32.shape, (out.shape, ref_f32.shape)
        # Tight check vs a reference with the same bf16 operand / intermediate
        # precision (residual diffs: f32 accumulation order + bf16 rounding of
        # the intermediate at ties).
        assert jnp.allclose(out, ref_match, rtol=5e-3, atol=5e-3), \
            f"config {idx}: mismatch vs bf16-matched reference"
        # Loose check vs the pure-f32 module semantics (bf16 MXU operands).
        assert jnp.allclose(out, ref_f32, rtol=5e-2, atol=5e-2), \
            f"config {idx}: mismatch vs f32 reference"

    print("KERNEL_OK")
</pallas_src>

<mosaic_0001>
module attributes {stable_mosaic.version = 11 : i64} {
  func.func @_gemm_bn_relu_kernel(%arg0: i32, %arg1: memref<16x36xbf16, #tpu.memory_space<vmem>>, %arg2: memref<36x1024xbf16, #tpu.memory_space<vmem>>, %arg3: memref<16x1xf32, #tpu.memory_space<vmem>>, %arg4: memref<16x1024xbf16, #tpu.memory_space<vmem>>) attributes {dimension_semantics = [#tpu.dimension_semantics<parallel>], iteration_bounds = array<i64: 2>, scalar_prefetch = 0 : i64, scratch_operands = 0 : i64, tpu.core_type = #tpu.core_type<tc>, window_params = [{pipeline_mode = #tpu.pipeline_mode<synchronous>, transform_indices = @transform_0, window_bounds = array<i64: 16, 36>}, {transform_indices = @transform_1, window_bounds = array<i64: 36, 1024>}, {pipeline_mode = #tpu.pipeline_mode<synchronous>, transform_indices = @transform_2, window_bounds = array<i64: 16, 1>}, {transform_indices = @transform_3, window_bounds = array<i64: 16, 1024>}]} {
    %c0 = arith.constant 0 : index
    %c0_0 = arith.constant 0 : index
    %0 = vector.load %arg1[%c0, %c0_0] : memref<16x36xbf16, #tpu.memory_space<vmem>>, vector<16x36xbf16>
    %c0_1 = arith.constant 0 : index
    %c0_2 = arith.constant 0 : index
    %1 = vector.load %arg2[%c0_1, %c0_2] : memref<36x1024xbf16, #tpu.memory_space<vmem>>, vector<36x1024xbf16>
    %cst = arith.constant dense<0.000000e+00> : vector<16x1024xf32>
    %2 = tpu.matmul %0, %1, %cst {dimension_numbers = #tpu.dot_dimension_numbers<[1], [0], [0], [1], [0, 0, 1, 1], [], []>} : vector<16x36xbf16>, vector<36x1024xbf16>, vector<16x1024xf32> -> vector<16x1024xf32>
    %c0_3 = arith.constant 0 : index
    %c0_4 = arith.constant 0 : index
    %3 = vector.load %arg3[%c0_3, %c0_4] : memref<16x1xf32, #tpu.memory_space<vmem>>, vector<16x1xf32>
    %4 = vector.broadcast %3 : vector<16x1xf32> to vector<16x1024xf32>
    %5 = arith.addf %2, %4 : vector<16x1024xf32>
    %cst_5 = arith.constant 0.000000e+00 : f32
    %6 = vector.broadcast %cst_5 : f32 to vector<16x1024xf32>
    %7 = arith.maximumf %5, %6 : vector<16x1024xf32>
    %8 = arith.truncf %7 : vector<16x1024xf32> to vector<16x1024xbf16>
    %c0_6 = arith.constant 0 : index
    %c0_7 = arith.constant 0 : index
    %9 = vector.load %arg4[%c0_6, %c0_7] : memref<16x1024xbf16, #tpu.memory_space<vmem>>, vector<16x1024xbf16>
    tpu.vector_store %arg4[%c0_6, %c0_7], %8 {strides = array<i32>} : memref<16x1024xbf16, #tpu.memory_space<vmem>>, vector<16x1024xbf16>,
    return
  }
  func.func @transform_0(%arg0: i32) -> (i32, i32) {
    %c0_i32 = arith.constant 0 : i32
    %c0_i32_0 = arith.constant 0 : i32
    %c0_i32_1 = arith.constant 0 : i32
    return %c0_i32, %c0_i32_0 : i32, i32
  }
  func.func @transform_1(%arg0: i32) -> (i32, i32) {
    %c0_i32 = arith.constant 0 : i32
    %c0_i32_0 = arith.constant 0 : i32
    return %c0_i32, %arg0 : i32, i32
  }
  func.func @transform_2(%arg0: i32) -> (i32, i32) {
    %c0_i32 = arith.constant 0 : i32
    %c0_i32_0 = arith.constant 0 : i32
    %c0_i32_1 = arith.constant 0 : i32
    return %c0_i32, %c0_i32_0 : i32, i32
  }
  func.func @transform_3(%arg0: i32) -> (i32, i32) {
    %c0_i32 = arith.constant 0 : i32
    %c0_i32_0 = arith.constant 0 : i32
    return %c0_i32, %arg0 : i32, i32
  }
}

module attributes {stable_mosaic.version = 11 : i64} {
  func.func @_gemm_bn_relu_kernel(%arg0: i32, %arg1: memref<16x48xbf16, #tpu.memory_space<vmem>>, %arg2: memref<48x1024xbf16, #tpu.memory_space<vmem>>, %arg3: memref<16x1xf32, #tpu.memory_space<vmem>>, %arg4: memref<16x1024xf32, #tpu.memory_space<vmem>>) attributes {dimension_semantics = [#tpu.dimension_semantics<parallel>], iteration_bounds = array<i64: 2>, scalar_prefetch = 0 : i64, scratch_operands = 0 : i64, tpu.core_type = #tpu.core_type<tc>, window_params = [{pipeline_mode = #tpu.pipeline_mode<synchronous>, transform_indices = @transform_0, window_bounds = array<i64: 16, 48>}, {transform_indices = @transform_1, window_bounds = array<i64: 48, 1024>}, {pipeline_mode = #tpu.pipeline_mode<synchronous>, transform_indices = @transform_2, window_bounds = array<i64: 16, 1>}, {transform_indices = @transform_3, window_bounds = array<i64: 16, 1024>}]} {
    %c0 = arith.constant 0 : index
    %c0_0 = arith.constant 0 : index
    %0 = vector.load %arg1[%c0, %c0_0] : memref<16x48xbf16, #tpu.memory_space<vmem>>, vector<16x48xbf16>
    %c0_1 = arith.constant 0 : index
    %c0_2 = arith.constant 0 : index
    %1 = vector.load %arg2[%c0_1, %c0_2] : memref<48x1024xbf16, #tpu.memory_space<vmem>>, vector<48x1024xbf16>
    %cst = arith.constant dense<0.000000e+00> : vector<16x1024xf32>
    %2 = tpu.matmul %0, %1, %cst {dimension_numbers = #tpu.dot_dimension_numbers<[1], [0], [0], [1], [0, 0, 1, 1], [], []>} : vector<16x48xbf16>, vector<48x1024xbf16>, vector<16x1024xf32> -> vector<16x1024xf32>
    %c0_3 = arith.constant 0 : index
    %c0_4 = arith.constant 0 : index
    %3 = vector.load %arg3[%c0_3, %c0_4] : memref<16x1xf32, #tpu.memory_space<vmem>>, vector<16x1xf32>
    %4 = vector.broadcast %3 : vector<16x1xf32> to vector<16x1024xf32>
    %5 = arith.addf %2, %4 : vector<16x1024xf32>
    %cst_5 = arith.constant 0.000000e+00 : f32
    %6 = vector.broadcast %cst_5 : f32 to vector<16x1024xf32>
    %7 = arith.maximumf %5, %6 : vector<16x1024xf32>
    %c0_6 = arith.constant 0 : index
    %c0_7 = arith.constant 0 : index
    %8 = vector.load %arg4[%c0_6, %c0_7] : memref<16x1024xf32, #tpu.memory_space<vmem>>, vector<16x1024xf32>
    tpu.vector_store %arg4[%c0_6, %c0_7], %7 {strides = array<i32>} : memref<16x1024xf32, #tpu.memory_space<vmem>>, vector<16x1024xf32>,
    return
  }
  func.func @transform_0(%arg0: i32) -> (i32, i32) {
    %c0_i32 = arith.constant 0 : i32
    %c0_i32_0 = arith.constant 0 : i32
    %c0_i32_1 = arith.constant 0 : i32
    return %c0_i32, %c0_i32_0 : i32, i32
  }
  func.func @transform_1(%arg0: i32) -> (i32, i32) {
    %c0_i32 = arith.constant 0 : i32
    %c0_i32_0 = arith.constant 0 : i32
    return %c0_i32, %arg0 : i32, i32
  }
  func.func @transform_2(%arg0: i32) -> (i32, i32) {
    %c0_i32 = arith.constant 0 : i32
    %c0_i32_0 = arith.constant 0 : i32
    %c0_i32_1 = arith.constant 0 : i32
    return %c0_i32, %c0_i32_0 : i32, i32
  }
  func.func @transform_3(%arg0: i32) -> (i32, i32) {
    %c0_i32 = arith.constant 0 : i32
    %c0_i32_0 = arith.constant 0 : i32
    return %c0_i32, %arg0 : i32, i32
  }
}

</mosaic_0001>

<bundles_post_ra>
// kernel: sep_conv3d_forward.2
= control target key start
LH: loop header
LB: loop body
LE: loop exit
PB: predicated region body
PF: predicated region fallthrough
CT: control target
= control target key end

     0   :  { %s881_s12 = smov 0   ;;  %s883_s13 = smov 0   ;;  %s1055_s0 = inlined_call_operand.vmem [shape: bf16[16,36], index: 0, kind: input, shape index: {}]   ;;  %s1056_s1 = inlined_call_operand.vmem [shape: bf16[36,2048], index: 1, kind: input, shape index: {}]   ;;  %s1057_s2 = inlined_call_operand.vmem [shape: f32[16,1], index: 2, kind: input, shape index: {}]   ;;  %s1058_s3 = inlined_call_operand.vmem [shape: bf16[16,2048], index: 3, kind: output, shape index: {}]  }
   0x1   :  { %s885_s14 = smov 0  }
   0x2 LB: > { %s735_s15 = sadd.s32 4294967295, %s858_s14   ;;  %s898_s16 = sadd.s32 1, %s858_s14   ;;  %s858_s14 = sphi %s885_s14, %s1062_s14   ;;  %s854_s13 = sphi %s883_s13, %s1061_s13   ;;  %s850_s12 = sphi %s881_s12, %s1060_s12  }
   0x3   : > { %s38_s17 = ssub.s32 %s858_s14, %s898_s16  ;;  %s41_s18 = sadd.s32 1, %s854_s13 }
   0x4   : > { %p39_p0 = scmp.eq.s32.totalorder %s38_s17, 0  ;;  %p48_p1 = scmp.ne.s32.totalorder %s854_s13, %s850_s12 }
   0x5   : > { %p49_p2 = scmp.eq.s32.totalorder %s858_s14, 0  ;;  %p99_p3 = scmp.eq.s32.totalorder %s735_s15, 1 }
   0x6   : > { %s909_s19 = scalar_select %p39_p0, %s854_s13, %s41_s18  }
   0x7   : > { %p50_p4 = por %p49_p2, %p48_p1  ;;  %p911_p5 = por %p99_p3, %p48_p1 }
   0x8   : > { %p738_p6 = scmp.ge.s32.totalorder %s858_s14, 2 }
   0xa   : > { %127 = sbr.rel (%p738_p6) target bundleno = 32 (0x20), region = 24 }
  0x11   : > { %130 = sbr.rel (!%p50_p4) target bundleno = 32 (0x20), region = 28  ;;  %s132_s21 = sand.u32 (%p50_p4), 1, %s854_s13  }
  0x12   : > { %s789_s22 = sshll.u32 (%p50_p4), %s858_s14, 5  ;;  %s799_s23 = smul.u32 (%p50_p4), 160, %s132_s21 }
  0x13   : > { %s921_s26 = scalar_lea.vmem (%p50_p4), %s1056_s1, %s789_s22 }
  0x14   : > { %v150_v0 = vld [vmem:[%s921_s26] sm:$0xff] (%p50_p4)  ;;  %v152_v1 = vld [vmem:[%s921_s26 + $0x8] sm:$0xff] (%p50_p4)  ;;  %v154_v2 = vld [vmem:[%s921_s26 + $0x10] sm:$0xff] (%p50_p4)  ;;  %s929_s27 = scalar_lea.vmem (%p50_p4), [#allocation2], %s799_s23 }
  0x15   : > { %v156_v3 = vld [vmem:[%s921_s26 + $0x18] sm:$0xff] (%p50_p4)  ;;  %v158_v4 = vld [vmem:[%s921_s26 + $0x40] sm:$0xff] (%p50_p4)  ;;  %v160_v5 = vld [vmem:[%s921_s26 + $0x48] sm:$0xff] (%p50_p4)  ;;  %151 = vst [vmem:[%s929_s27] sm:$0xff] (%p50_p4), %v150_v0 }
  0x16   : > { %153 = vst [vmem:[%s929_s27 + $0x8] sm:$0xff] (%p50_p4), %v152_v1  ;;  %155 = vst [vmem:[%s929_s27 + $0x10] sm:$0xff] (%p50_p4), %v154_v2  ;;  %v162_v6 = vld [vmem:[%s921_s26 + $0x50] sm:$0xff] (%p50_p4)  ;;  %v164_v7 = vld [vmem:[%s921_s26 + $0x58] sm:$0xff] (%p50_p4) }
  0x17   : > { %157 = vst [vmem:[%s929_s27 + $0x18] sm:$0xff] (%p50_p4), %v156_v3  ;;  %159 = vst [vmem:[%s929_s27 + $0x20] sm:$0xff] (%p50_p4), %v158_v4  ;;  %v166_v8 = vld [vmem:[%s921_s26 + $0x80] sm:$0xff] (%p50_p4)  ;;  %v168_v9 = vld [vmem:[%s921_s26 + $0x88] sm:$0xff] (%p50_p4) }
  0x18   : > { %161 = vst [vmem:[%s929_s27 + $0x28] sm:$0xff] %v160_v5  ;;  %163 = vst [vmem:[%s929_s27 + $0x30] sm:$0xff] %v162_v6  ;;  %v170_v10 = vld [vmem:[%s921_s26 + $0x90] sm:$0xff]  ;;  %v172_v11 = vld [vmem:[%s921_s26 + $0x98] sm:$0xff] }
  0x19   : > { %165 = vst [vmem:[%s929_s27 + $0x38] sm:$0xff] %v164_v7  ;;  %167 = vst [vmem:[%s929_s27 + $0x40] sm:$0xff] %v166_v8  ;;  %v174_v12 = vld [vmem:[%s921_s26 + $0xc0] sm:$0xff]  ;;  %v176_v13 = vld [vmem:[%s921_s26 + $0xc8] sm:$0xff] }
  0x1a   : > { %169 = vst [vmem:[%s929_s27 + $0x48] sm:$0xff] %v168_v9  ;;  %171 = vst [vmem:[%s929_s27 + $0x50] sm:$0xff] %v170_v10  ;;  %v178_v14 = vld [vmem:[%s921_s26 + $0xd0] sm:$0xff]  ;;  %v180_v15 = vld [vmem:[%s921_s26 + $0xd8] sm:$0xff] }
  0x1b   : > { %173 = vst [vmem:[%s929_s27 + $0x58] sm:$0xff] %v172_v11  ;;  %175 = vst [vmem:[%s929_s27 + $0x60] sm:$0xff] %v174_v12  ;;  %v182_v16 = vld [vmem:[%s921_s26 + $0x100] sm:$0xff]  ;;  %v184_v17 = vld [vmem:[%s921_s26 + $0x108] sm:$0xff] }
  0x1c   : > { %177 = vst [vmem:[%s929_s27 + $0x68] sm:$0xff] %v176_v13  ;;  %179 = vst [vmem:[%s929_s27 + $0x70] sm:$0xff] %v178_v14  ;;  %v186_v18 = vld [vmem:[%s921_s26 + $0x110] sm:$0xff]  ;;  %v188_v19 = vld [vmem:[%s921_s26 + $0x118] sm:$0xff] }
  0x1d   : > { %181 = vst [vmem:[%s929_s27 + $0x78] sm:$0xff] %v180_v15  ;;  %183 = vst [vmem:[%s929_s27 + $0x80] sm:$0xff] %v182_v16 }
  0x1e   : > { %185 = vst [vmem:[%s929_s27 + $0x88] sm:$0xff] %v184_v17  ;;  %187 = vst [vmem:[%s929_s27 + $0x90] sm:$0xff] %v186_v18 }
  0x1f   : > { %189 = vst [vmem:[%s929_s27 + $0x98] sm:$0xff] %v188_v19 }
  0x20 PF: > { %p741_p7 = scmp.ge.s32.totalorder %s858_s14, 1  ;;  %p194_p8 = scmp.lt.s32.totalorder %s858_s14, 3 }
  0x22   : > { %p195_p9 = pnand %p741_p7, %p194_p8 }
  0x23   : > { %s201_s28 = sand.u32 (!%p195_p9), 1, %s850_s12   ;;  %v860_v20 = vmov (!%p195_p9), 0   ;;  %v248_v21 = vld [vmem:[%s1057_s2] sm:$0xff] (!%p195_p9)  ;;  %v249_v38 = vld [vmem:[%s1057_s2 + $0x8] sm:$0xff] (!%p195_p9)  ;;  %vm369_vm0 = vcmask (!%p195_p9), 1041408   ;;  %vm365_vm1 = vcmask (!%p195_p9), 293888  }
  0x24   : > { %198 = sbr.rel (%p195_p9) target bundleno = 298 (0x12a), region = 51  ;;  %426 = vmatprep.mubr.bf16.mxu0 (!%p195_p9), %v860_v20  ;;  %469 = vmatprep.mubr.bf16.mxu1 (!%p195_p9), %v860_v20  ;;  %v831_v55 = vld [vmem:[%s1055_s0] sm:$0xff] (!%p195_p9)   ;;  %s742_s10 = sshll.u32 (!%p195_p9), %s201_s28, 6 }
  0x25   : > { %s800_s29 = smul.u32 (!%p195_p9), 160, %s201_s28  ;;  %826 = vset.pattern.permute.xlu0 (!%p195_p9), %v860_v20  ;;  %s1020_s11 = scalar_lea.vmem (!%p195_p9), [#allocation3], %s742_s10 }
  0x26   : > { %252 = vperm.xlu0 (!%p195_p9), %826, %v248_v21  }
  0x27   : > { %s976_s5 = scalar_lea.vmem (!%p195_p9), [#allocation2], %s800_s29 }
  0x28   : > { %v228_v22 = vld [vmem:[%s976_s5] sm:$0xff] (!%p195_p9)  ;;  %v229_v24 = vld [vmem:[%s976_s5 + $0x8] sm:$0xff] (!%p195_p9)  ;;  %v230_v45 = vld [vmem:[%s976_s5 + $0x10] sm:$0xff] (!%p195_p9) }
  0x29   : > { %v232_v23 = vld [vmem:[%s976_s5 + $0x20] sm:$0xff] (!%p195_p9)  ;;  %v233_v26 = vld [vmem:[%s976_s5 + $0x28] sm:$0xff] (!%p195_p9)  ;;  %v234_v46 = vld [vmem:[%s976_s5 + $0x30] sm:$0xff] (!%p195_p9) }
  0x2a   : > { %v745_v25 = vcombine.high (!%p195_p9), %v228_v22, %v232_v23  ;;  %v744_v27 = vcombine.low (!%p195_p9), %v228_v22, %v232_v23  ;;  %v236_v28 = vld [vmem:[%s976_s5 + $0x40] sm:$0xff] (!%p195_p9)  ;;  %v747_v30 = vcombine.high (!%p195_p9), %v229_v24, %v233_v26  ;;  %v746_v31 = vcombine.low (!%p195_p9), %v229_v24, %v233_v26  ;;  %v237_v33 = vld [vmem:[%s976_s5 + $0x48] sm:$0xff] (!%p195_p9)  ;;  %257 = vperm.xlu0 (!%p195_p9), %826, %v249_v38   ;;  %v231_v47 = vld [vmem:[%s976_s5 + $0x18] sm:$0xff] (!%p195_p9) }
  0x2b   : > { %v240_v29 = vld [vmem:[%s976_s5 + $0x60] sm:$0xff]  ;;  %v241_v34 = vld [vmem:[%s976_s5 + $0x68] sm:$0xff]  ;;  %v235_v48 = vld [vmem:[%s976_s5 + $0x38] sm:$0xff]  ;;  %v749_v50 = vcombine.high %v230_v45, %v234_v46  ;;  %v748_v58 = vcombine.low %v230_v45, %v234_v46  ;;  %s798_s12 = sshll.u32 (%p911_p5), %s735_s15, 5 }
  0x2c   : > { %v753_v32 = vcombine.high %v236_v28, %v240_v29  ;;  %v244_v35 = vld [vmem:[%s976_s5 + $0x80] sm:$0x33]  ;;  %394 = vmatprep.subr.bf16.mxu0 %v745_v25  ;;  %v755_v36 = vcombine.high %v237_v33, %v241_v34  ;;  %v245_v37 = vld [vmem:[%s976_s5 + $0x88] sm:$0x33]  ;;  %437 = vmatprep.subr.bf16.mxu1 %v747_v30  ;;  %v752_v39 = vcombine.low %v236_v28, %v240_v29  ;;  %v238_v53 = vld [vmem:[%s976_s5 + $0x50] sm:$0xff]  ;;  %s647_s21 = scalar_lea.vmem (%p911_p5), %s1058_s3, %s798_s12 }
  0x2d   : > { %395 = vmatpush1.bf16.msra.mxu0 %v744_v27  ;;  %438 = vmatpush1.bf16.msra.mxu1 %v746_v31  ;;  %v754_v40 = vcombine.low %v237_v33, %v241_v34  ;;  %v761_v41 = vcombine.high %v244_v35, %v244_v35  ;;  %v760_v42 = vcombine.low %v244_v35, %v244_v35  ;;  %v242_v54 = vld [vmem:[%s976_s5 + $0x70] sm:$0xff]  ;;  %v239_v56 = vld [vmem:[%s976_s5 + $0x58] sm:$0xff] }
  0x2e   : > { %396 = vmatprep.subr.bf16.mxu0 %v753_v32  ;;  %439 = vmatprep.subr.bf16.mxu1 %v755_v36  ;;  %v763_v43 = vcombine.high %v245_v37, %v245_v37  ;;  %v762_v44 = vcombine.low %v245_v37, %v245_v37  ;;  %v751_v52 = vcombine.high %v231_v47, %v235_v48  ;;  %v243_v57 = vld [vmem:[%s976_s5 + $0x78] sm:$0xff]  ;;  %v246_v62 = vld [vmem:[%s976_s5 + $0x90] sm:$0x33] }
  0x2f   : > { %v371_v49 = vsel %vm369_vm0, %v760_v42, 0  ;;  %v750_v59 = vcombine.low %v231_v47, %v235_v48  ;;  %v757_v60 = vcombine.high %v238_v53, %v242_v54  ;;  %v759_v61 = vcombine.high %v239_v56, %v243_v57  ;;  %v247_v63 = vld [vmem:[%s976_s5 + $0x98] sm:$0x33] }
  0x30   : > { %v377_v51 = vsel %vm369_vm0, %v762_v44, 0  ;;  %v756_v0 = vcombine.low %v238_v53, %v242_v54  ;;  %v758_v1 = vcombine.low %v239_v56, %v243_v57  ;;  %v765_v2 = vcombine.high %v246_v62, %v246_v62 }
  0x31   : > { %397 = vmatpush1.bf16.msra.mxu0 %v752_v39  ;;  %440 = vmatpush1.bf16.msra.mxu1 %v754_v40  ;;  %v764_v3 = vcombine.low %v246_v62, %v246_v62  ;;  %v767_v4 = vcombine.high %v247_v63, %v247_v63  ;;  %v766_v5 = vcombine.low %v247_v63, %v247_v63 }
  0x32   : > { %768 = vmatprep.subr.msk.bf16.mxu0 %vm369_vm0, %v761_v41  ;;  %770 = vmatprep.subr.msk.bf16.mxu1 %vm369_vm0, %v763_v43 }
  0x33   : > { %v383_v6 = vsel %vm369_vm0, %v764_v3, 0  ;;  %v389_v7 = vsel %vm369_vm0, %v766_v5, 0 }
  0x35   : > { %399 = vmatpush1.bf16.msra.mxu0 %v371_v49  ;;  %442 = vmatpush1.bf16.msra.mxu1 %v377_v51 }
  0x36   : > { %480 = vmatprep.subr.bf16.mxu0 %v749_v50  ;;  %523 = vmatprep.subr.bf16.mxu1 %v751_v52 }
  0x38   : > { %769 = vmatmul.mubr.msk.bf16.vlgmr.msra.gmra.mrb[0].mxu0 %vm365_vm1, %v831_v55  ;;  %771 = vmatmul.mubr.msk.bf16.vlgmr.msra.gmra.mrb[0].mxu1 %vm365_vm1, %v831_v55 }
  0x39   : > { %481 = vmatpush1.bf16.msra.mxu0 %v748_v58  ;;  %524 = vmatpush1.bf16.msra.mxu1 %v750_v59 }
  0x3a   : > { %482 = vmatprep.subr.bf16.mxu0 %v757_v60  ;;  %525 = vmatprep.subr.bf16.mxu1 %v759_v61 }
  0x3b   : > { %512 = vmatprep.mubr.bf16.mxu0 %v860_v20  ;;  %555 = vmatprep.mubr.bf16.mxu1 %v860_v20 }
  0x3d   : > { %483 = vmatpush1.bf16.msra.mxu0 %v756_v0  ;;  %526 = vmatpush1.bf16.msra.mxu1 %v758_v1 }
  0x3e   : > { %772 = vmatprep.subr.msk.bf16.mxu0 %vm369_vm0, %v765_v2  ;;  %774 = vmatprep.subr.msk.bf16.mxu1 %vm369_vm0, %v767_v4 }
  0x41   : > { %485 = vmatpush1.bf16.msra.mxu0 %v383_v6  ;;  %528 = vmatpush1.bf16.msra.mxu1 %v389_v7 }
  0x44   : > { %773 = vmatmul.mubr.msk.bf16.vlgmr.msra.gmra.mrb[4].mxu0 %vm365_vm1, %v831_v55  ;;  %775 = vmatmul.mubr.msk.bf16.vlgmr.msra.gmra.mrb[4].mxu1 %vm365_vm1, %v831_v55 }
  0xa5   : > { %v253_v8 = vpop.permute.xlu0 %252 }
  0xa9   : > { %v258_v10 = vpop.permute.xlu0 %257 }
 0x10b   : > { %v428_v9 = vpop.f32.mrb[0].mxu0  ;;  %v471_v12 = vpop.f32.mrb[0].mxu1 }
 0x10c   : > { %v429_v11 = vadd.f32 %v428_v9, %v253_v8  ;;  %v430_v13 = vpop.f32.mrb[1].mxu0  ;;  %v472_v14 = vadd.f32 %v471_v12, %v253_v8  ;;  %v473_v16 = vpop.f32.mrb[1].mxu1 }
 0x10d   : > { %v431_v15 = vadd.f32 %v430_v13, %v253_v8  ;;  %v432_v17 = vpop.f32.mrb[2].mxu0  ;;  %v474_v19 = vadd.f32 %v473_v16, %v253_v8  ;;  %v475_v21 = vpop.f32.mrb[2].mxu1 }
 0x10e   : > { %v566_v18 = vmax.f32 %v429_v11, 0.0  ;;  %v433_v20 = vadd.f32 %v432_v17, %v258_v10  ;;  %v434_v22 = vpop.f32.mrb[3].mxu0  ;;  %v568_v23 = vmax.f32 %v472_v14, 0.0  ;;  %v476_v25 = vadd.f32 %v475_v21, %v258_v10  ;;  %v477_v27 = vpop.f32.mrb[3].mxu1 }
 0x10f   : > { %v567_v24 = vmax.f32 %v431_v15, 0.0  ;;  %v435_v26 = vadd.f32 %v434_v22, %v258_v10  ;;  %v569_v28 = vmax.f32 %v474_v19, 0.0  ;;  %v478_v30 = vadd.f32 %v477_v27, %v258_v10 }
 0x110   : > { %v574_v29 = vmax.f32 %v433_v20, 0.0  ;;  %v576_v32 = vmax.f32 %v476_v25, 0.0 }
 0x111   : > { %v790_v31 = vpack.c.bf16 %v567_v24, %v566_v18  ;;  %v575_v33 = vmax.f32 %v435_v26, 0.0  ;;  %v791_v34 = vpack.c.bf16 %v569_v28, %v568_v23  ;;  %v577_v35 = vmax.f32 %v478_v30, 0.0 }
 0x113   : > { %630 = vst [vmem:[%s1020_s11] sm:$0xff] %v790_v31  ;;  %v794_v36 = vpack.c.bf16 %v575_v33, %v574_v29  ;;  %631 = vst [vmem:[%s1020_s11 + $0x8] sm:$0xff] %v791_v34  ;;  %v795_v37 = vpack.c.bf16 %v577_v35, %v576_v32 }
 0x115   : > { %634 = vst [vmem:[%s1020_s11 + $0x20] sm:$0xff] %v794_v36  ;;  %635 = vst [vmem:[%s1020_s11 + $0x28] sm:$0xff] %v795_v37 }
 0x117   : > { %v514_v38 = vpop.f32.mrb[4].mxu0  ;;  %v557_v40 = vpop.f32.mrb[4].mxu1 }
 0x118   : > { %v515_v39 = vadd.f32 %v514_v38, %v253_v8  ;;  %v516_v41 = vpop.f32.mrb[5].mxu0  ;;  %v558_v42 = vadd.f32 %v557_v40, %v253_v8  ;;  %v559_v44 = vpop.f32.mrb[5].mxu1 }
 0x119   : > { %v517_v43 = vadd.f32 %v516_v41, %v253_v8  ;;  %v518_v45 = vpop.f32.mrb[6].mxu0  ;;  %v560_v47 = vadd.f32 %v559_v44, %v253_v8  ;;  %v561_v49 = vpop.f32.mrb[6].mxu1 }
 0x11a   : > { %v570_v46 = vmax.f32 %v515_v39, 0.0  ;;  %v519_v48 = vadd.f32 %v518_v45, %v258_v10  ;;  %v520_v50 = vpop.f32.mrb[7].mxu0  ;;  %v572_v51 = vmax.f32 %v558_v42, 0.0  ;;  %v562_v53 = vadd.f32 %v561_v49, %v258_v10  ;;  %v563_v55 = vpop.f32.mrb[7].mxu1  ;;  %v660_v2 = vld [vmem:[%s1020_s11] sm:$0xff] (%p911_p5)  ;;  %v662_v3 = vld [vmem:[%s1020_s11 + $0x8] sm:$0xff] (%p911_p5) }
 0x11b   : > { %v571_v52 = vmax.f32 %v517_v43, 0.0  ;;  %v521_v54 = vadd.f32 %v520_v50, %v258_v10  ;;  %v573_v56 = vmax.f32 %v560_v47, 0.0  ;;  %v564_v58 = vadd.f32 %v563_v55, %v258_v10  ;;  %644 = sbr.rel (!%p911_p5) target bundleno = 298 (0x12a), region = 59  ;;  %661 = vst [vmem:[%s647_s21] sm:$0xff] (%p911_p5), %v660_v2  ;;  %663 = vst [vmem:[%s647_s21 + $0x8] sm:$0xff] (%p911_p5), %v662_v3 }
 0x11c   : > { %v578_v57 = vmax.f32 %v519_v48, 0.0  ;;  %v580_v60 = vmax.f32 %v562_v53, 0.0  ;;  %v668_v6 = vld [vmem:[%s1020_s11 + $0x20] sm:$0xff] (%p911_p5)  ;;  %v670_v7 = vld [vmem:[%s1020_s11 + $0x28] sm:$0xff] (%p911_p5) }
 0x11d   : > { %v792_v59 = vpack.c.bf16 %v571_v52, %v570_v46  ;;  %v579_v61 = vmax.f32 %v521_v54, 0.0  ;;  %v793_v62 = vpack.c.bf16 %v573_v56, %v572_v51  ;;  %v581_v63 = vmax.f32 %v564_v58, 0.0  ;;  %669 = vst [vmem:[%s647_s21 + $0x40] sm:$0xff] (%p911_p5), %v668_v6  ;;  %671 = vst [vmem:[%s647_s21 + $0x48] sm:$0xff] (%p911_p5), %v670_v7 }
 0x11f   : > { %632 = vst [vmem:[%s1020_s11 + $0x10] sm:$0xff] %v792_v59  ;;  %v796_v0 = vpack.c.bf16 %v579_v61, %v578_v57  ;;  %633 = vst [vmem:[%s1020_s11 + $0x18] sm:$0xff] %v793_v62  ;;  %v797_v1 = vpack.c.bf16 %v581_v63, %v580_v60 }
 0x121   : > { %636 = vst [vmem:[%s1020_s11 + $0x30] sm:$0xff] %v796_v0  ;;  %637 = vst [vmem:[%s1020_s11 + $0x38] sm:$0xff] %v797_v1 }
 0x126   : > { %v664_v4 = vld [vmem:[%s1020_s11 + $0x10] sm:$0xff]  ;;  %v666_v5 = vld [vmem:[%s1020_s11 + $0x18] sm:$0xff] }
 0x127   : > { %665 = vst [vmem:[%s647_s21 + $0x10] sm:$0xff] %v664_v4  ;;  %667 = vst [vmem:[%s647_s21 + $0x18] sm:$0xff] %v666_v5 }
 0x128   : > { %v672_v8 = vld [vmem:[%s1020_s11 + $0x30] sm:$0xff]  ;;  %v674_v9 = vld [vmem:[%s1020_s11 + $0x38] sm:$0xff] }
 0x129   : > { %673 = vst [vmem:[%s647_s21 + $0x50] sm:$0xff] %v672_v8  ;;  %675 = vst [vmem:[%s647_s21 + $0x58] sm:$0xff] %v674_v9 }
 0x12a PF: > { %p10_p10 = scmp.ge.s32.totalorder %s898_s16, 4   ;;  %s1060_s12 = smov %s854_s13 }
 0x12b   : > { %s1061_s13 = smov %s909_s19  ;;  %s1062_s14 = smov %s898_s16 }
 0x12c   :  { %12 = sbr.rel (!%p10_p10) target bundleno = 2 (0x2), region = 113 }

// kernel: sep_conv3d_forward.3
= control target key start
LH: loop header
LB: loop body
LE: loop exit
PB: predicated region body
PF: predicated region fallthrough
CT: control target
= control target key end

     0   :  { %s836_s12 = smov 0   ;;  %s838_s13 = smov 0   ;;  %s1030_s0 = inlined_call_operand.vmem [shape: bf16[16,48], index: 0, kind: input, shape index: {}]   ;;  %s1031_s1 = inlined_call_operand.vmem [shape: bf16[48,2048], index: 1, kind: input, shape index: {}]   ;;  %s1032_s2 = inlined_call_operand.vmem [shape: f32[16,1], index: 2, kind: input, shape index: {}]   ;;  %s1033_s3 = inlined_call_operand.vmem [shape: f32[16,2048], index: 3, kind: output, shape index: {}]  }
   0x1   :  { %s840_s14 = smov 0  }
   0x2 LB: > { %s718_s15 = sadd.s32 4294967295, %s813_s14   ;;  %s853_s16 = sadd.s32 1, %s813_s14   ;;  %s813_s14 = sphi %s840_s14, %s1037_s14   ;;  %s809_s13 = sphi %s838_s13, %s1036_s13   ;;  %s805_s12 = sphi %s836_s12, %s1035_s12  }
   0x3   : > { %s38_s17 = ssub.s32 %s813_s14, %s853_s16  ;;  %s41_s18 = sadd.s32 1, %s809_s13 }
   0x4   : > { %p39_p0 = scmp.eq.s32.totalorder %s38_s17, 0  ;;  %p48_p1 = scmp.ne.s32.totalorder %s809_s13, %s805_s12 }
   0x5   : > { %p49_p2 = scmp.eq.s32.totalorder %s813_s14, 0  ;;  %p99_p3 = scmp.eq.s32.totalorder %s718_s15, 1 }
   0x6   : > { %s864_s19 = scalar_select %p39_p0, %s809_s13, %s41_s18  }
   0x7   : > { %p50_p4 = por %p49_p2, %p48_p1  ;;  %p866_p5 = por %p99_p3, %p48_p1 }
   0x8   : > { %p721_p6 = scmp.ge.s32.totalorder %s813_s14, 2 }
   0xa   : > { %127 = sbr.rel (%p721_p6) target bundleno = 34 (0x22), region = 24 }
  0x11   : > { %130 = sbr.rel (!%p50_p4) target bundleno = 34 (0x22), region = 28  ;;  %s132_s21 = sand.u32 (%p50_p4), 1, %s809_s13  }
  0x12   : > { %s760_s22 = sshll.u32 (%p50_p4), %s813_s14, 5  ;;  %s762_s23 = smul.u32 (%p50_p4), 192, %s132_s21 }
  0x13   : > { %s876_s26 = scalar_lea.vmem (%p50_p4), %s1031_s1, %s760_s22 }
  0x14   : > { %v150_v0 = vld [vmem:[%s876_s26] sm:$0xff] (%p50_p4)  ;;  %v152_v1 = vld [vmem:[%s876_s26 + $0x8] sm:$0xff] (%p50_p4)  ;;  %v154_v2 = vld [vmem:[%s876_s26 + $0x10] sm:$0xff] (%p50_p4)  ;;  %s884_s27 = scalar_lea.vmem (%p50_p4), [#allocation2], %s762_s23 }
  0x15   : > { %v156_v3 = vld [vmem:[%s876_s26 + $0x18] sm:$0xff] (%p50_p4)  ;;  %v158_v4 = vld [vmem:[%s876_s26 + $0x40] sm:$0xff] (%p50_p4)  ;;  %v160_v5 = vld [vmem:[%s876_s26 + $0x48] sm:$0xff] (%p50_p4)  ;;  %151 = vst [vmem:[%s884_s27] sm:$0xff] (%p50_p4), %v150_v0 }
  0x16   : > { %153 = vst [vmem:[%s884_s27 + $0x8] sm:$0xff] (%p50_p4), %v152_v1  ;;  %155 = vst [vmem:[%s884_s27 + $0x10] sm:$0xff] (%p50_p4), %v154_v2  ;;  %v162_v6 = vld [vmem:[%s876_s26 + $0x50] sm:$0xff] (%p50_p4)  ;;  %v164_v7 = vld [vmem:[%s876_s26 + $0x58] sm:$0xff] (%p50_p4) }
  0x17   : > { %157 = vst [vmem:[%s884_s27 + $0x18] sm:$0xff] (%p50_p4), %v156_v3  ;;  %159 = vst [vmem:[%s884_s27 + $0x20] sm:$0xff] (%p50_p4), %v158_v4  ;;  %v166_v8 = vld [vmem:[%s876_s26 + $0x80] sm:$0xff] (%p50_p4)  ;;  %v168_v9 = vld [vmem:[%s876_s26 + $0x88] sm:$0xff] (%p50_p4) }
  0x18   : > { %161 = vst [vmem:[%s884_s27 + $0x28] sm:$0xff] %v160_v5  ;;  %163 = vst [vmem:[%s884_s27 + $0x30] sm:$0xff] %v162_v6  ;;  %v170_v10 = vld [vmem:[%s876_s26 + $0x90] sm:$0xff]  ;;  %v172_v11 = vld [vmem:[%s876_s26 + $0x98] sm:$0xff] }
  0x19   : > { %165 = vst [vmem:[%s884_s27 + $0x38] sm:$0xff] %v164_v7  ;;  %167 = vst [vmem:[%s884_s27 + $0x40] sm:$0xff] %v166_v8  ;;  %v174_v12 = vld [vmem:[%s876_s26 + $0xc0] sm:$0xff]  ;;  %v176_v13 = vld [vmem:[%s876_s26 + $0xc8] sm:$0xff] }
  0x1a   : > { %169 = vst [vmem:[%s884_s27 + $0x48] sm:$0xff] %v168_v9  ;;  %171 = vst [vmem:[%s884_s27 + $0x50] sm:$0xff] %v170_v10  ;;  %v178_v14 = vld [vmem:[%s876_s26 + $0xd0] sm:$0xff]  ;;  %v180_v15 = vld [vmem:[%s876_s26 + $0xd8] sm:$0xff] }
  0x1b   : > { %173 = vst [vmem:[%s884_s27 + $0x58] sm:$0xff] %v172_v11  ;;  %175 = vst [vmem:[%s884_s27 + $0x60] sm:$0xff] %v174_v12  ;;  %v182_v16 = vld [vmem:[%s876_s26 + $0x100] sm:$0xff]  ;;  %v184_v17 = vld [vmem:[%s876_s26 + $0x108] sm:$0xff] }
  0x1c   : > { %177 = vst [vmem:[%s884_s27 + $0x68] sm:$0xff] %v176_v13  ;;  %179 = vst [vmem:[%s884_s27 + $0x70] sm:$0xff] %v178_v14  ;;  %v186_v18 = vld [vmem:[%s876_s26 + $0x110] sm:$0xff]  ;;  %v188_v19 = vld [vmem:[%s876_s26 + $0x118] sm:$0xff] }
  0x1d   : > { %181 = vst [vmem:[%s884_s27 + $0x78] sm:$0xff] %v180_v15  ;;  %183 = vst [vmem:[%s884_s27 + $0x80] sm:$0xff] %v182_v16  ;;  %v190_v20 = vld [vmem:[%s876_s26 + $0x140] sm:$0xff]  ;;  %v192_v21 = vld [vmem:[%s876_s26 + $0x148] sm:$0xff] }
  0x1e   : > { %185 = vst [vmem:[%s884_s27 + $0x88] sm:$0xff] %v184_v17  ;;  %187 = vst [vmem:[%s884_s27 + $0x90] sm:$0xff] %v186_v18  ;;  %v194_v22 = vld [vmem:[%s876_s26 + $0x150] sm:$0xff]  ;;  %v196_v23 = vld [vmem:[%s876_s26 + $0x158] sm:$0xff] }
  0x1f   : > { %189 = vst [vmem:[%s884_s27 + $0x98] sm:$0xff] %v188_v19  ;;  %191 = vst [vmem:[%s884_s27 + $0xa0] sm:$0xff] %v190_v20 }
  0x20   : > { %193 = vst [vmem:[%s884_s27 + $0xa8] sm:$0xff] %v192_v21  ;;  %195 = vst [vmem:[%s884_s27 + $0xb0] sm:$0xff] %v194_v22 }
  0x21   : > { %197 = vst [vmem:[%s884_s27 + $0xb8] sm:$0xff] %v196_v23 }
  0x22 PF: > { %p724_p7 = scmp.ge.s32.totalorder %s813_s14, 1  ;;  %p202_p8 = scmp.lt.s32.totalorder %s813_s14, 3 }
  0x24   : > { %p203_p9 = pnand %p724_p7, %p202_p8 }
  0x25   : > { %s209_s28 = sand.u32 (!%p203_p9), 1, %s805_s12   ;;  %v815_v24 = vmov (!%p203_p9), 0   ;;  %v260_v25 = vld [vmem:[%s1032_s2] sm:$0xff] (!%p203_p9)  ;;  %v261_v26 = vld [vmem:[%s1032_s2 + $0x8] sm:$0xff] (!%p203_p9)  ;;  %vm397_vm0 = vcmask (!%p203_p9), 392192  }
  0x26   : > { %206 = sbr.rel (%p203_p9) target bundleno = 298 (0x12a), region = 51  ;;  %433 = vmatprep.mubr.bf16.mxu0 (!%p203_p9), %v815_v24  ;;  %476 = vmatprep.mubr.bf16.mxu1 (!%p203_p9), %v815_v24  ;;  %v790_v59 = vld [vmem:[%s1030_s0] sm:$0xff] (!%p203_p9)   ;;  %s725_s10 = sshll.u32 (!%p203_p9), %s209_s28, 7 }
  0x27   : > { %s763_s29 = smul.u32 (!%p203_p9), 192, %s209_s28  ;;  %789 = vset.pattern.permute.xlu0 (!%p203_p9), %v815_v24  ;;  %s979_s11 = scalar_lea.vmem (!%p203_p9), [#allocation3], %s725_s10 }
  0x28   : > { %264 = vperm.xlu0 (!%p203_p9), %789, %v260_v25  }
  0x29   : > { %s942_s7 = scalar_lea.vmem (!%p203_p9), [#allocation2], %s763_s29 }
  0x2a   : > { %v236_v27 = vld [vmem:[%s942_s7] sm:$0xff] (!%p203_p9)  ;;  %v237_v29 = vld [vmem:[%s942_s7 + $0x8] sm:$0xff] (!%p203_p9)  ;;  %v238_v49 = vld [vmem:[%s942_s7 + $0x10] sm:$0xff] (!%p203_p9) }
  0x2b   : > { %v240_v28 = vld [vmem:[%s942_s7 + $0x20] sm:$0xff] (!%p203_p9)  ;;  %v241_v31 = vld [vmem:[%s942_s7 + $0x28] sm:$0xff] (!%p203_p9)  ;;  %v242_v50 = vld [vmem:[%s942_s7 + $0x30] sm:$0xff] (!%p203_p9) }
  0x2c   : > { %v728_v30 = vcombine.high (!%p203_p9), %v236_v27, %v240_v28  ;;  %v727_v32 = vcombine.low (!%p203_p9), %v236_v27, %v240_v28  ;;  %v244_v33 = vld [vmem:[%s942_s7 + $0x40] sm:$0xff] (!%p203_p9)  ;;  %v730_v35 = vcombine.high (!%p203_p9), %v237_v29, %v241_v31  ;;  %v729_v36 = vcombine.low (!%p203_p9), %v237_v29, %v241_v31  ;;  %v245_v38 = vld [vmem:[%s942_s7 + $0x48] sm:$0xff] (!%p203_p9)  ;;  %269 = vperm.xlu0 (!%p203_p9), %789, %v261_v26   ;;  %v239_v51 = vld [vmem:[%s942_s7 + $0x18] sm:$0xff] (!%p203_p9) }
  0x2d   : > { %v248_v34 = vld [vmem:[%s942_s7 + $0x60] sm:$0xff]  ;;  %v249_v39 = vld [vmem:[%s942_s7 + $0x68] sm:$0xff]  ;;  %v243_v52 = vld [vmem:[%s942_s7 + $0x38] sm:$0xff]  ;;  %v732_v55 = vcombine.high %v238_v49, %v242_v50  ;;  %v731_v62 = vcombine.low %v238_v49, %v242_v50  ;;  %s761_s12 = sshll.u32 (%p866_p5), %s718_s15, 6 }
  0x2e   : > { %v736_v37 = vcombine.high %v244_v33, %v248_v34  ;;  %v252_v40 = vld [vmem:[%s942_s7 + $0x80] sm:$0xff]  ;;  %401 = vmatprep.subr.bf16.mxu0 %v728_v30  ;;  %v738_v41 = vcombine.high %v245_v38, %v249_v39  ;;  %v253_v43 = vld [vmem:[%s942_s7 + $0x88] sm:$0xff]  ;;  %444 = vmatprep.subr.bf16.mxu1 %v730_v35  ;;  %v735_v45 = vcombine.low %v244_v33, %v248_v34  ;;  %v246_v57 = vld [vmem:[%s942_s7 + $0x50] sm:$0xff]  ;;  %s614_s20 = scalar_lea.vmem (%p866_p5), %s1033_s3, %s761_s12 }
  0x2f   : > { %v256_v42 = vld [vmem:[%s942_s7 + $0xa0] sm:$0xff]  ;;  %v257_v44 = vld [vmem:[%s942_s7 + $0xa8] sm:$0xff]  ;;  %402 = vmatpush1.bf16.msra.mxu0 %v727_v32  ;;  %445 = vmatpush1.bf16.msra.mxu1 %v729_v36  ;;  %v737_v46 = vcombine.low %v245_v38, %v249_v39  ;;  %v734_v56 = vcombine.high %v239_v51, %v243_v52  ;;  %v250_v58 = vld [vmem:[%s942_s7 + $0x70] sm:$0xff]  ;;  %v733_v63 = vcombine.low %v239_v51, %v243_v52 }
  0x30   : > { %403 = vmatprep.subr.bf16.mxu0 %v736_v37  ;;  %v744_v47 = vcombine.high %v252_v40, %v256_v42  ;;  %446 = vmatprep.subr.bf16.mxu1 %v738_v41  ;;  %v746_v48 = vcombine.high %v253_v43, %v257_v44  ;;  %v743_v53 = vcombine.low %v252_v40, %v256_v42  ;;  %v247_v60 = vld [vmem:[%s942_s7 + $0x58] sm:$0xff]  ;;  %v254_v2 = vld [vmem:[%s942_s7 + $0x90] sm:$0xff] }
  0x31   : > { %v745_v54 = vcombine.low %v253_v43, %v257_v44  ;;  %v251_v61 = vld [vmem:[%s942_s7 + $0x78] sm:$0xff]  ;;  %v740_v0 = vcombine.high %v246_v57, %v250_v58  ;;  %v258_v3 = vld [vmem:[%s942_s7 + $0xb0] sm:$0xff]  ;;  %v739_v6 = vcombine.low %v246_v57, %v250_v58 }
  0x32   : > { %v742_v1 = vcombine.high %v247_v60, %v251_v61  ;;  %v255_v4 = vld [vmem:[%s942_s7 + $0x98] sm:$0xff]  ;;  %v741_v7 = vcombine.low %v247_v60, %v251_v61  ;;  %v748_v8 = vcombine.high %v254_v2, %v258_v3  ;;  %v747_v10 = vcombine.low %v254_v2, %v258_v3 }
  0x33   : > { %404 = vmatpush1.bf16.msra.mxu0 %v735_v45  ;;  %447 = vmatpush1.bf16.msra.mxu1 %v737_v46  ;;  %v259_v5 = vld [vmem:[%s942_s7 + $0xb8] sm:$0xff] }
  0x34   : > { %405 = vmatprep.subr.bf16.mxu0 %v744_v47  ;;  %448 = vmatprep.subr.bf16.mxu1 %v746_v48  ;;  %v750_v9 = vcombine.high %v255_v4, %v259_v5  ;;  %v749_v11 = vcombine.low %v255_v4, %v259_v5 }
  0x37   : > { %406 = vmatpush1.bf16.msra.mxu0 %v743_v53  ;;  %449 = vmatpush1.bf16.msra.mxu1 %v745_v54 }
  0x38   : > { %487 = vmatprep.subr.bf16.mxu0 %v732_v55  ;;  %530 = vmatprep.subr.bf16.mxu1 %v734_v56 }
  0x3a   : > { %751 = vmatmul.mubr.msk.bf16.vlgmr.msra.gmra.mrb[0].mxu0 %vm397_vm0, %v790_v59  ;;  %752 = vmatmul.mubr.msk.bf16.vlgmr.msra.gmra.mrb[0].mxu1 %vm397_vm0, %v790_v59 }
  0x3b   : > { %488 = vmatpush1.bf16.msra.mxu0 %v731_v62  ;;  %531 = vmatpush1.bf16.msra.mxu1 %v733_v63 }
  0x3c   : > { %489 = vmatprep.subr.bf16.mxu0 %v740_v0  ;;  %532 = vmatprep.subr.bf16.mxu1 %v742_v1 }
  0x3d   : > { %519 = vmatprep.mubr.bf16.mxu0 %v815_v24  ;;  %562 = vmatprep.mubr.bf16.mxu1 %v815_v24 }
  0x3f   : > { %490 = vmatpush1.bf16.msra.mxu0 %v739_v6  ;;  %533 = vmatpush1.bf16.msra.mxu1 %v741_v7 }
  0x40   : > { %491 = vmatprep.subr.bf16.mxu0 %v748_v8  ;;  %534 = vmatprep.subr.bf16.mxu1 %v750_v9 }
  0x43   : > { %492 = vmatpush1.bf16.msra.mxu0 %v747_v10  ;;  %535 = vmatpush1.bf16.msra.mxu1 %v749_v11 }
  0x46   : > { %753 = vmatmul.mubr.msk.bf16.vlgmr.msra.gmra.mrb[4].mxu0 %vm397_vm0, %v790_v59  ;;  %754 = vmatmul.mubr.msk.bf16.vlgmr.msra.gmra.mrb[4].mxu1 %vm397_vm0, %v790_v59 }
  0xa7   : > { %v265_v12 = vpop.permute.xlu0 %264 }
  0xab   : > { %v270_v14 = vpop.permute.xlu0 %269 }
 0x10d   : > { %v435_v13 = vpop.f32.mrb[0].mxu0  ;;  %v478_v16 = vpop.f32.mrb[0].mxu1 }
 0x10e   : > { %v436_v15 = vadd.f32 %v435_v13, %v265_v12  ;;  %v437_v17 = vpop.f32.mrb[1].mxu0  ;;  %v479_v18 = vadd.f32 %v478_v16, %v265_v12  ;;  %v480_v20 = vpop.f32.mrb[1].mxu1 }
 0x10f   : > { %v438_v19 = vadd.f32 %v437_v17, %v265_v12  ;;  %v439_v21 = vpop.f32.mrb[2].mxu0  ;;  %v481_v23 = vadd.f32 %v480_v20, %v265_v12  ;;  %v482_v25 = vpop.f32.mrb[2].mxu1 }
 0x110   : > { %v573_v22 = vmax.f32 %v436_v15, 0.0  ;;  %v440_v24 = vadd.f32 %v439_v21, %v270_v14  ;;  %v441_v26 = vpop.f32.mrb[3].mxu0  ;;  %v575_v27 = vmax.f32 %v479_v18, 0.0  ;;  %v483_v29 = vadd.f32 %v482_v25, %v270_v14  ;;  %v484_v31 = vpop.f32.mrb[3].mxu1 }
 0x111   : > { %v574_v28 = vmax.f32 %v438_v19, 0.0  ;;  %v442_v30 = vadd.f32 %v441_v26, %v270_v14  ;;  %v576_v32 = vmax.f32 %v481_v23, 0.0  ;;  %v485_v34 = vadd.f32 %v484_v31, %v270_v14 }
 0x112   : > { %589 = vst [vmem:[%s979_s11] sm:$0xff] %v573_v22  ;;  %v581_v33 = vmax.f32 %v440_v24, 0.0  ;;  %591 = vst [vmem:[%s979_s11 + $0x10] sm:$0xff] %v575_v27  ;;  %v583_v35 = vmax.f32 %v483_v29, 0.0 }
 0x113   : > { %590 = vst [vmem:[%s979_s11 + $0x8] sm:$0xff] %v574_v28  ;;  %v582_v36 = vmax.f32 %v442_v30, 0.0  ;;  %592 = vst [vmem:[%s979_s11 + $0x18] sm:$0xff] %v576_v32  ;;  %v584_v37 = vmax.f32 %v485_v34, 0.0 }
 0x114   : > { %597 = vst [vmem:[%s979_s11 + $0x40] sm:$0xff] %v581_v33  ;;  %599 = vst [vmem:[%s979_s11 + $0x50] sm:$0xff] %v583_v35 }
 0x115   : > { %598 = vst [vmem:[%s979_s11 + $0x48] sm:$0xff] %v582_v36  ;;  %600 = vst [vmem:[%s979_s11 + $0x58] sm:$0xff] %v584_v37 }
 0x119   : > { %v521_v38 = vpop.f32.mrb[4].mxu0  ;;  %v564_v40 = vpop.f32.mrb[4].mxu1  ;;  %v627_v62 = vld [vmem:[%s979_s11] sm:$0xff] (%p866_p5)  ;;  %v631_v0 = vld [vmem:[%s979_s11 + $0x10] sm:$0xff] (%p866_p5) }
 0x11a   : > { %v522_v39 = vadd.f32 %v521_v38, %v265_v12  ;;  %v523_v41 = vpop.f32.mrb[5].mxu0  ;;  %v565_v42 = vadd.f32 %v564_v40, %v265_v12  ;;  %v566_v44 = vpop.f32.mrb[5].mxu1  ;;  %v629_v63 = vld [vmem:[%s979_s11 + $0x8] sm:$0xff] (%p866_p5)  ;;  %v633_v1 = vld [vmem:[%s979_s11 + $0x18] sm:$0xff] (%p866_p5)  ;;  %628 = vst [vmem:[%s614_s20] sm:$0xff] (%p866_p5), %v627_v62  ;;  %632 = vst [vmem:[%s614_s20 + $0x10] sm:$0xff] (%p866_p5), %v631_v0 }
 0x11b   : > { %v524_v43 = vadd.f32 %v523_v41, %v265_v12  ;;  %v525_v45 = vpop.f32.mrb[6].mxu0  ;;  %v567_v47 = vadd.f32 %v566_v44, %v265_v12  ;;  %v568_v49 = vpop.f32.mrb[6].mxu1  ;;  %611 = sbr.rel (!%p866_p5) target bundleno = 298 (0x12a), region = 59  ;;  %630 = vst [vmem:[%s614_s20 + $0x8] sm:$0xff] (%p866_p5), %v629_v63  ;;  %634 = vst [vmem:[%s614_s20 + $0x18] sm:$0xff] (%p866_p5), %v633_v1  ;;  %v643_v6 = vld [vmem:[%s979_s11 + $0x40] sm:$0xff] (%p866_p5) }
 0x11c   : > { %v577_v46 = vmax.f32 %v522_v39, 0.0  ;;  %v526_v48 = vadd.f32 %v525_v45, %v270_v14  ;;  %v527_v50 = vpop.f32.mrb[7].mxu0  ;;  %v579_v51 = vmax.f32 %v565_v42, 0.0  ;;  %v569_v53 = vadd.f32 %v568_v49, %v270_v14  ;;  %v570_v55 = vpop.f32.mrb[7].mxu1  ;;  %644 = vst [vmem:[%s614_s20 + $0x80] sm:$0xff] (%p866_p5), %v643_v6  ;;  %v645_v7 = vld [vmem:[%s979_s11 + $0x48] sm:$0xff] (%p866_p5) }
 0x11d   : > { %v578_v52 = vmax.f32 %v524_v43, 0.0  ;;  %v528_v54 = vadd.f32 %v527_v50, %v270_v14  ;;  %v580_v56 = vmax.f32 %v567_v47, 0.0  ;;  %v571_v58 = vadd.f32 %v570_v55, %v270_v14  ;;  %v647_v8 = vld [vmem:[%s979_s11 + $0x50] sm:$0xff] (%p866_p5)  ;;  %v649_v9 = vld [vmem:[%s979_s11 + $0x58] sm:$0xff] (%p866_p5)  ;;  %646 = vst [vmem:[%s614_s20 + $0x88] sm:$0xff] (%p866_p5), %v645_v7 }
 0x11e   : > { %593 = vst [vmem:[%s979_s11 + $0x20] sm:$0xff] %v577_v46  ;;  %v585_v57 = vmax.f32 %v526_v48, 0.0  ;;  %595 = vst [vmem:[%s979_s11 + $0x30] sm:$0xff] %v579_v51  ;;  %v587_v59 = vmax.f32 %v569_v53, 0.0 }
 0x11f   : > { %594 = vst [vmem:[%s979_s11 + $0x28] sm:$0xff] %v578_v52  ;;  %v586_v60 = vmax.f32 %v528_v54, 0.0  ;;  %596 = vst [vmem:[%s979_s11 + $0x38] sm:$0xff] %v580_v56  ;;  %v588_v61 = vmax.f32 %v571_v58, 0.0 }
 0x120   : > { %601 = vst [vmem:[%s979_s11 + $0x60] sm:$0xff] %v585_v57  ;;  %603 = vst [vmem:[%s979_s11 + $0x70] sm:$0xff] %v587_v59 }
 0x121   : > { %602 = vst [vmem:[%s979_s11 + $0x68] sm:$0xff] %v586_v60  ;;  %604 = vst [vmem:[%s979_s11 + $0x78] sm:$0xff] %v588_v61 }
 0x122   : > { %648 = vst [vmem:[%s614_s20 + $0x90] sm:$0xff] %v647_v8  ;;  %650 = vst [vmem:[%s614_s20 + $0x98] sm:$0xff] %v649_v9 }
 0x125   : > { %v635_v2 = vld [vmem:[%s979_s11 + $0x20] sm:$0xff]  ;;  %v639_v4 = vld [vmem:[%s979_s11 + $0x30] sm:$0xff] }
 0x126   : > { %v637_v3 = vld [vmem:[%s979_s11 + $0x28] sm:$0xff]  ;;  %636 = vst [vmem:[%s614_s20 + $0x20] sm:$0xff] %v635_v2  ;;  %v641_v5 = vld [vmem:[%s979_s11 + $0x38] sm:$0xff]  ;;  %640 = vst [vmem:[%s614_s20 + $0x30] sm:$0xff] %v639_v4 }
 0x127   : > { %638 = vst [vmem:[%s614_s20 + $0x28] sm:$0xff] %v637_v3  ;;  %642 = vst [vmem:[%s614_s20 + $0x38] sm:$0xff] %v641_v5  ;;  %v651_v10 = vld [vmem:[%s979_s11 + $0x60] sm:$0xff]  ;;  %v655_v12 = vld [vmem:[%s979_s11 + $0x70] sm:$0xff] }
 0x128   : > { %v653_v11 = vld [vmem:[%s979_s11 + $0x68] sm:$0xff]  ;;  %652 = vst [vmem:[%s614_s20 + $0xa0] sm:$0xff] %v651_v10  ;;  %656 = vst [vmem:[%s614_s20 + $0xb0] sm:$0xff] %v655_v12  ;;  %v657_v13 = vld [vmem:[%s979_s11 + $0x78] sm:$0xff] }
 0x129   : > { %654 = vst [vmem:[%s614_s20 + $0xa8] sm:$0xff] %v653_v11  ;;  %658 = vst [vmem:[%s614_s20 + $0xb8] sm:$0xff] %v657_v13 }
 0x12a PF: > { %p10_p10 = scmp.ge.s32.totalorder %s853_s16, 4   ;;  %s1035_s12 = smov %s809_s13 }
 0x12b   : > { %s1036_s13 = smov %s864_s19  ;;  %s1037_s14 = smov %s853_s16 }
 0x12c   :  { %12 = sbr.rel (!%p10_p10) target bundleno = 2 (0x2), region = 113 }

</bundles_post_ra>
